<compile_context>
chip_gen: v6e
topology: v6e:2x2x1
jax: 0.10.0
libtpu: 0.0.40
codegen_flags: <defaults>
</compile_context>

<pallas_src>
import math
from functools import partial

import numpy as np
import jax
import jax.numpy as jnp
from jax.experimental import pallas as pl
from jax.experimental.pallas import tpu as pltpu


_PARITIES = ((0, 0), (0, 1), (1, 0), (1, 1))   # parity index p = 2*a + b


# --------------------------------------------------------------------------
# weight folding: nearest-x2 upsample + 3x3 conv  ->  sub-pixel kernels
# --------------------------------------------------------------------------
def _fold_upsample_into_weights(weight):
    """weight (Cout, Cin, 3, 3) OIHW -> folded taps (3, 3, Cin, 2, 2, Cout) f32.

    out[2y+a, 2x+b] = sum_{kh,kw} w[kh,kw] * up_pad[2y+a+kh, 2x+b+kw] and
    up[p, q] = x[p//2, q//2], so the (1px-padded) original-resolution source
    offsets are dy = 1 + (a+kh-1)//2, dx = 1 + (b+kw-1)//2; taps hitting the
    same source pixel are summed.  Nonzeros live only at dy in {a, a+1},
    dx in {b, b+1} (4/9 density).
    """
    Cout, Cin = weight.shape[0], weight.shape[1]
    w_hwio = jnp.transpose(weight, (2, 3, 1, 0)).astype(jnp.float32)   # (3,3,Cin,Cout)
    w_big = jnp.zeros((3, 3, Cin, 2, 2, Cout), dtype=jnp.float32)
    for a in range(2):
        for b in range(2):
            for kh in range(3):
                for kw in range(3):
                    dy = 1 + (a + kh - 1) // 2
                    dx = 1 + (b + kw - 1) // 2
                    w_big = w_big.at[dy, dx, :, a, b, :].add(w_hwio[kh, kw])
    return w_big


def _pack_fused(w_big):
    """(3,3,Cin,2,2,Cout) -> (9*Cin, 4*Cout): one matmul for all 4 parities."""
    _, _, Cin, _, _, Cout = w_big.shape
    return w_big.reshape(9 * Cin, 4 * Cout)


def _pack_split(w_big):
    """(3,3,Cin,2,2,Cout) -> (4, 4*Cin, Cout): dense per-parity kernels."""
    _, _, Cin, _, _, Cout = w_big.shape
    ws = []
    for a, b in _PARITIES:
        wp = w_big[a:a + 2, b:b + 2, :, a, b, :]          # the 4 nonzero taps
        ws.append(wp.reshape(4 * Cin, Cout))
    return jnp.stack(ws, axis=0)


# --------------------------------------------------------------------------
# tile-size selection (per-step working set incl. in-kernel temporaries)
# --------------------------------------------------------------------------
def _pick_tile_h(H, Wp, Cin, Cout, split, mxu_bytes):
    """Largest H-tile (multiple of 8, dividing H) whose per-step working set —
    double-buffered input/halo/output blocks, resident weights, and the
    in-kernel temporaries (xt concat copy, im2col slab, f32 accumulator) —
    stays under ~10 MiB (vmem_limit_bytes is 48 MiB, so plenty of headroom on
    v5e/v6e/v7x).  Prefers >= 2 tiles so the leading parallel grid axis feeds
    both v7x TensorCores even at batch 1."""
    budget = 10 * 1024 * 1024
    W = Wp - 2
    cands = [th for th in range(8, H + 1, 8) if H % th == 0]
    if not cands:
        return H
    w_elems = 16 * Cin * Cout if split else 36 * Cin * Cout

    def need(th):
        inp = 2 * 4 * (th * Wp * Cin + 2 * Wp * Cin)            # dbl-buffered f32 in + halo
        outp = 2 * 4 * (th * W * 4 * Cout)                       # dbl-buffered f32 out
        wgt = 2 * mxu_bytes * w_elems + 2 * 4 * 4 * Cout         # weights + bias
        xt = 4 * (th + 2) * Wp * Cin                             # in-kernel concat copy
        col = mxu_bytes * th * W * (4 * Cin if split else 9 * Cin)   # im2col slab
        acc = 4 * th * W * (Cout if split else 4 * Cout)         # f32 accumulator
        return inp + outp + wgt + xt + col + acc

    fitting = [th for th in cands if need(th) <= budget] or [cands[0]]
    multi = [th for th in fitting if H // th >= 2]
    return max(multi) if multi else max(fitting)


# --------------------------------------------------------------------------
# kernel: one (H-tile h, batch n) step
# --------------------------------------------------------------------------
def _upsample_conv_kernel(xm_ref, xh_ref, w_ref, b_ref, o_ref, *, split, mxu_dtype):
    # xm_ref: (1, TH, W+2, Cin)  main rows of the 1px-padded original image
    # xh_ref: (1, 2,  W+2, Cin)  2-row bottom halo (same array, next rows)
    # w_ref : (9*Cin, 4*Cout)            fused  folded weights (mxu_dtype), or
    #         (4, 4*Cin, Cout)           dense per-parity weights (mxu_dtype)
    # b_ref : (1, 4*Cout)        f32 bias tiled over the 4 parities
    # o_ref : (1, TH*W, 4*Cout)  parity-packed output slab
    TH, Wp, Cin = xm_ref.shape[1], xm_ref.shape[2], xm_ref.shape[3]
    W = Wp - 2
    Cout = o_ref.shape[2] // 4

    # TH+2 padded rows this tile needs (halo arrives via the 2nd BlockSpec).
    # TODO(synk): a single overlapping-window (pl.Element) spec would remove
    # this concat copy and the second DMA stream.
    xt = jnp.concatenate([xm_ref[0], xh_ref[0]], axis=0)          # (TH+2, Wp, Cin) f32

    def im2col(taps):
        # shifted slabs cast to the MXU dtype (bf16 halves the slab stores)
        slabs = [xt[dy:dy + TH, dx:dx + W, :].astype(mxu_dtype) for dy, dx in taps]
        return jnp.concatenate(slabs, axis=-1).reshape(TH * W, len(taps) * Cin)

    bias = b_ref[...]                                             # (1, 4*Cout) f32

    if split:
        # 4 dense per-parity matmuls, K = 4*Cin: no zero MACs (2.25x fewer
        # than the fused form); used when Cout is large enough to fill MXU N.
        for p, (a, b) in enumerate(_PARITIES):
            xk = im2col([(dy, dx) for dy in (a, a + 1) for dx in (b, b + 1)])
            acc = jax.lax.dot_general(
                xk, w_ref[p], (((1,), (0,)), ((), ())),
                preferred_element_type=jnp.float32)               # (TH*W, Cout) f32
            acc = acc + bias[:, p * Cout:(p + 1) * Cout]
            o_ref[0, :, p * Cout:(p + 1) * Cout] = acc.astype(o_ref.dtype)
    else:
        # single fused matmul producing all 4 parities at once (keeps the MXU
        # N dimension = 4*Cout filled when Cout is small).
        x9 = im2col([(dy, dx) for dy in range(3) for dx in range(3)])
        acc = jax.lax.dot_general(
            x9, w_ref[...], (((1,), (0,)), ((), ())),
            preferred_element_type=jnp.float32)                   # (TH*W, 4*Cout) f32
        o_ref[0] = (acc + bias).astype(o_ref.dtype)


# --------------------------------------------------------------------------
# wrapper
# --------------------------------------------------------------------------
@partial(jax.jit, static_argnames=("tile_h", "parity_split", "mxu_dtype"))
def upsample_forward(x_nchw, weight, bias, *, tile_h=None, parity_split=None,
                     mxu_dtype=jnp.bfloat16):
    """x_nchw: (N, Cin, H, W); weight: (Cout, Cin, 3, 3); bias: (Cout,)."""
    N, Cin, H, W = x_nchw.shape
    Cout = weight.shape[0]
    assert weight.shape == (Cout, Cin, 3, 3)
    assert H % 2 == 0, "H must be even"  # TODO(synk): odd H needs an element-offset halo spec
    # TODO(synk): for Cin < ~32 (e.g. the spec's C=4 test) the NHWC layout puts
    # Cin on the 128-lane axis and the kernel is layout-bound; a small-channel
    # variant should put W (or W*Cin) on lanes and use shifted VPU FMAs.

    if parity_split is None:
        parity_split = Cout >= 128   # dense per-parity pays off once Cout fills MXU N
    mxu_np = np.dtype(mxu_dtype)

    # Only the SMALL original-resolution input is padded host-side; the 4x
    # upsampled tensor is never formed in HBM.
    # TODO(synk): fold the 1px zero-pad into the kernel (pl.when on edge tiles)
    # to save one HBM round trip of the input.
    x = jnp.transpose(x_nchw, (0, 2, 3, 1))                       # (N, H, W, Cin)
    xp = jnp.pad(x, ((0, 0), (1, 1), (1, 1), (0, 0)))             # (N, H+2, W+2, Cin)
    Wp = W + 2

    w_big = _fold_upsample_into_weights(weight)                   # fold in f32 ...
    w_pk = (_pack_split(w_big) if parity_split else _pack_fused(w_big)).astype(mxu_dtype)
    b4 = jnp.tile(bias.astype(jnp.float32), 4).reshape(1, 4 * Cout)

    TH = tile_h if tile_h is not None else _pick_tile_h(
        H, Wp, Cin, Cout, parity_split, mxu_np.itemsize)
    assert H % TH == 0 and TH % 2 == 0
    n_th = H // TH

    if parity_split:
        w_spec = pl.BlockSpec((4, 4 * Cin, Cout), lambda h, n: (0, 0, 0))
        flops = 2 * N * H * W * 16 * Cin * Cout
    else:
        w_spec = pl.BlockSpec((9 * Cin, 4 * Cout), lambda h, n: (0, 0))
        flops = 2 * N * H * W * 36 * Cin * Cout
    bytes_accessed = (xp.size * 4 + w_pk.size * mxu_np.itemsize + b4.size * 4
                      + N * H * W * 4 * Cout * 4)

    kernel = partial(_upsample_conv_kernel, split=parity_split, mxu_dtype=mxu_dtype)

    out_packed = pl.pallas_call(
        kernel,
        out_shape=jax.ShapeDtypeStruct((N, H * W, 4 * Cout), x.dtype),
        grid_spec=pltpu.PrefetchScalarGridSpec(
            num_scalar_prefetch=0,
            # spatial tiles lead: _pick_tile_h prefers n_th >= 2, so the leading
            # "parallel" axis keeps both v7x TensorCores busy even at batch 1.
            grid=(n_th, N),
            in_specs=[
                # main TH rows of the padded original-resolution image
                pl.BlockSpec((1, TH, Wp, Cin), lambda h, n: (n, h, 0, 0)),
                # 2-row bottom halo (same array, blocked in 2-row units)
                pl.BlockSpec((1, 2, Wp, Cin),
                             lambda h, n: (n, (h + 1) * (TH // 2), 0, 0)),
                w_spec,
                pl.BlockSpec((1, 4 * Cout), lambda h, n: (0, 0)),
            ],
            out_specs=pl.BlockSpec((1, TH * W, 4 * Cout), lambda h, n: (n, h, 0)),
        ),
        compiler_params=pltpu.CompilerParams(
            dimension_semantics=("parallel", "parallel"),
            vmem_limit_bytes=48 * 1024 * 1024),
        cost_estimate=pl.CostEstimate(flops=flops, transcendentals=0,
                                      bytes_accessed=bytes_accessed),
    )(xp, xp, w_pk, b4)

    # One transpose is needed anyway to return NCHW; the same single XLA copy
    # also un-packs the (a, b) parities.
    # TODO(synk): consumers that accept parity-packed NHWC could skip this copy.
    out = out_packed.reshape(N, H, W, 2, 2, Cout)
    out = jnp.transpose(out, (0, 5, 1, 3, 2, 4))                  # (N, Cout, H, 2, W, 2)
    return out.reshape(N, Cout, 2 * H, 2 * W)


# --------------------------------------------------------------------------
# pure-JAX reference: F.interpolate(scale=2, nearest) + Conv2d(3x3, pad=1)
# --------------------------------------------------------------------------
def _reference(x_nchw, weight, bias):
    x = jnp.repeat(jnp.repeat(x_nchw, 2, axis=2), 2, axis=3)
    out = jax.lax.conv_general_dilated(
        x, weight, window_strides=(1, 1), padding=((1, 1), (1, 1)),
        dimension_numbers=("NCHW", "OIHW", "NCHW"))
    return out + bias[None, :, None, None]


if __name__ == "__main__":
    N, C, H, W = 2, 4, 16, 16
    key = jax.random.PRNGKey(0)
    kx, kw, kb = jax.random.split(key, 3)

    x = jax.random.normal(kx, (N, C, H, W), dtype=jnp.float32)

    # deterministic PyTorch-style init: uniform(-1/sqrt(fan_in), 1/sqrt(fan_in))
    fan_in = C * 3 * 3
    bound = 1.0 / math.sqrt(fan_in)
    weight = jax.random.uniform(kw, (C, C, 3, 3), jnp.float32, -bound, bound)
    bias = jax.random.uniform(kb, (C,), jnp.float32, -bound, bound)

    ref = jax.block_until_ready(_reference(x, weight, bias))

    # default bf16-MXU path (tolerance loosened accordingly)
    out = jax.block_until_ready(upsample_forward(x, weight, bias))
    assert out.shape == (N, C, 2 * H, 2 * W), out.shape
    assert jnp.allclose(out, ref, rtol=4e-2, atol=4e-2), \
        float(jnp.max(jnp.abs(out - ref)))

    # exact f32-MXU path keeps the tight tolerance
    out32 = jax.block_until_ready(
        upsample_forward(x, weight, bias, mxu_dtype=jnp.float32))
    assert jnp.allclose(out32, ref, rtol=1e-4, atol=1e-4), \
        float(jnp.max(jnp.abs(out32 - ref)))

    # larger-channel config exercises the dense per-parity (split) path
    C2 = 128
    kx2, kw2, kb2 = jax.random.split(jax.random.PRNGKey(1), 3)
    x2 = jax.random.normal(kx2, (1, C2, H, W), dtype=jnp.float32)
    bound2 = 1.0 / math.sqrt(C2 * 9)
    w2 = jax.random.uniform(kw2, (C2, C2, 3, 3), jnp.float32, -bound2, bound2)
    b2 = jax.random.uniform(kb2, (C2,), jnp.float32, -bound2, bound2)
    out2 = jax.block_until_ready(upsample_forward(x2, w2, b2, parity_split=True))
    ref2 = jax.block_until_ready(_reference(x2, w2, b2))
    assert jnp.allclose(out2, ref2, rtol=4e-2, atol=4e-2), \
        float(jnp.max(jnp.abs(out2 - ref2)))

    print("KERNEL_OK")
</pallas_src>

<mosaic_0001>
module attributes {stable_mosaic.version = 11 : i64} {
  func.func @_upsample_conv_kernel(%arg0: i32, %arg1: i32, %arg2: memref<1x8x18x4xf32, #tpu.memory_space<vmem>>, %arg3: memref<1x2x18x4xf32, #tpu.memory_space<vmem>>, %arg4: memref<36x16xbf16, #tpu.memory_space<vmem>>, %arg5: memref<1x16xf32, #tpu.memory_space<vmem>>, %arg6: memref<1x128x16xf32, #tpu.memory_space<vmem>>) attributes {dimension_semantics = [#tpu.dimension_semantics<parallel>, #tpu.dimension_semantics<parallel>], iteration_bounds = array<i64: 2, 2>, scalar_prefetch = 0 : i64, scratch_operands = 0 : i64, tpu.core_type = #tpu.core_type<tc>, window_params = [{transform_indices = @transform_0, window_bounds = array<i64: 1, 8, 18, 4>}, {transform_indices = @transform_1, window_bounds = array<i64: 1, 2, 18, 4>}, {pipeline_mode = #tpu.pipeline_mode<synchronous>, transform_indices = @transform_2, window_bounds = array<i64: 36, 16>}, {pipeline_mode = #tpu.pipeline_mode<synchronous>, transform_indices = @transform_3, window_bounds = array<i64: 1, 16>}, {transform_indices = @transform_4, window_bounds = array<i64: 1, 128, 16>}]} {
    %c0 = arith.constant 0 : index
    %c0_0 = arith.constant 0 : index
    %c0_1 = arith.constant 0 : index
    %c0_2 = arith.constant 0 : index
    %0 = vector.load %arg2[%c0, %c0_0, %c0_1, %c0_2] : memref<1x8x18x4xf32, #tpu.memory_space<vmem>>, vector<1x8x18x4xf32>
    %1 = vector.shape_cast %0 : vector<1x8x18x4xf32> to vector<8x18x4xf32>
    %c0_3 = arith.constant 0 : index
    %c0_4 = arith.constant 0 : index
    %c0_5 = arith.constant 0 : index
    %c0_6 = arith.constant 0 : index
    %2 = vector.load %arg3[%c0_3, %c0_4, %c0_5, %c0_6] : memref<1x2x18x4xf32, #tpu.memory_space<vmem>>, vector<1x2x18x4xf32>
    %3 = vector.shape_cast %2 : vector<1x2x18x4xf32> to vector<2x18x4xf32>
    %4 = tpu.concatenate %1, %3 in 0 : vector<8x18x4xf32>, vector<2x18x4xf32> -> vector<10x18x4xf32>
    %c0_7 = arith.constant 0 : index
    %c0_8 = arith.constant 0 : index
    %5 = vector.load %arg5[%c0_7, %c0_8] : memref<1x16xf32, #tpu.memory_space<vmem>>, vector<1x16xf32>
    %6 = vector.extract_strided_slice %4 {offsets = [0, 0, 0], sizes = [8, 16, 4], strides = [1, 1, 1]} : vector<10x18x4xf32> to vector<8x16x4xf32>
    %7 = arith.truncf %6 : vector<8x16x4xf32> to vector<8x16x4xbf16>
    %8 = vector.extract_strided_slice %4 {offsets = [0, 1, 0], sizes = [8, 16, 4], strides = [1, 1, 1]} : vector<10x18x4xf32> to vector<8x16x4xf32>
    %9 = arith.truncf %8 : vector<8x16x4xf32> to vector<8x16x4xbf16>
    %10 = vector.extract_strided_slice %4 {offsets = [0, 2, 0], sizes = [8, 16, 4], strides = [1, 1, 1]} : vector<10x18x4xf32> to vector<8x16x4xf32>
    %11 = arith.truncf %10 : vector<8x16x4xf32> to vector<8x16x4xbf16>
    %12 = vector.extract_strided_slice %4 {offsets = [1, 0, 0], sizes = [8, 16, 4], strides = [1, 1, 1]} : vector<10x18x4xf32> to vector<8x16x4xf32>
    %13 = arith.truncf %12 : vector<8x16x4xf32> to vector<8x16x4xbf16>
    %14 = vector.extract_strided_slice %4 {offsets = [1, 1, 0], sizes = [8, 16, 4], strides = [1, 1, 1]} : vector<10x18x4xf32> to vector<8x16x4xf32>
    %15 = arith.truncf %14 : vector<8x16x4xf32> to vector<8x16x4xbf16>
    %16 = vector.extract_strided_slice %4 {offsets = [1, 2, 0], sizes = [8, 16, 4], strides = [1, 1, 1]} : vector<10x18x4xf32> to vector<8x16x4xf32>
    %17 = arith.truncf %16 : vector<8x16x4xf32> to vector<8x16x4xbf16>
    %18 = vector.extract_strided_slice %4 {offsets = [2, 0, 0], sizes = [8, 16, 4], strides = [1, 1, 1]} : vector<10x18x4xf32> to vector<8x16x4xf32>
    %19 = arith.truncf %18 : vector<8x16x4xf32> to vector<8x16x4xbf16>
    %20 = vector.extract_strided_slice %4 {offsets = [2, 1, 0], sizes = [8, 16, 4], strides = [1, 1, 1]} : vector<10x18x4xf32> to vector<8x16x4xf32>
    %21 = arith.truncf %20 : vector<8x16x4xf32> to vector<8x16x4xbf16>
    %22 = vector.extract_strided_slice %4 {offsets = [2, 2, 0], sizes = [8, 16, 4], strides = [1, 1, 1]} : vector<10x18x4xf32> to vector<8x16x4xf32>
    %23 = arith.truncf %22 : vector<8x16x4xf32> to vector<8x16x4xbf16>
    %24 = tpu.concatenate %7, %9, %11, %13, %15, %17, %19, %21, %23 in 2 : vector<8x16x4xbf16>, vector<8x16x4xbf16>, vector<8x16x4xbf16>, vector<8x16x4xbf16>, vector<8x16x4xbf16>, vector<8x16x4xbf16>, vector<8x16x4xbf16>, vector<8x16x4xbf16>, vector<8x16x4xbf16> -> vector<8x16x36xbf16>
    %25 = vector.shape_cast %24 : vector<8x16x36xbf16> to vector<128x36xbf16>
    %c0_9 = arith.constant 0 : index
    %c0_10 = arith.constant 0 : index
    %26 = vector.load %arg4[%c0_9, %c0_10] : memref<36x16xbf16, #tpu.memory_space<vmem>>, vector<36x16xbf16>
    %cst = arith.constant dense<0.000000e+00> : vector<128x16xf32>
    %27 = tpu.matmul %25, %26, %cst {dimension_numbers = #tpu.dot_dimension_numbers<[1], [0], [0], [1], [0, 0, 1, 1], [], []>} : vector<128x36xbf16>, vector<36x16xbf16>, vector<128x16xf32> -> vector<128x16xf32>
    %28 = vector.broadcast %5 : vector<1x16xf32> to vector<128x16xf32>
    %29 = arith.addf %27, %28 : vector<128x16xf32>
    %c0_11 = arith.constant 0 : index
    %c0_12 = arith.constant 0 : index
    %c0_13 = arith.constant 0 : index
    %30 = vector.load %arg6[%c0_11, %c0_12, %c0_13] : memref<1x128x16xf32, #tpu.memory_space<vmem>>, vector<1x128x16xf32>
    %31 = vector.shape_cast %30 : vector<1x128x16xf32> to vector<128x16xf32>
    %32 = vector.shape_cast %29 : vector<128x16xf32> to vector<1x128x16xf32>
    tpu.vector_store %arg6[%c0_11, %c0_12, %c0_13], %32 {strides = array<i32>} : memref<1x128x16xf32, #tpu.memory_space<vmem>>, vector<1x128x16xf32>,
    return
  }
  func.func @transform_0(%arg0: i32, %arg1: i32) -> (i32, i32, i32, i32) {
    %c0_i32 = arith.constant 0 : i32
    %c0_i32_0 = arith.constant 0 : i32
    %c0_i32_1 = arith.constant 0 : i32
    return %arg1, %arg0, %c0_i32, %c0_i32_0 : i32, i32, i32, i32
  }
  func.func @transform_1(%arg0: i32, %arg1: i32) -> (i32, i32, i32, i32) {
    %c1_i32 = arith.constant 1 : i32
    %0 = arith.addi %arg0, %c1_i32 : i32
    %c4_i32 = arith.constant 4 : i32
    %1 = arith.muli %0, %c4_i32 : i32
    %c0_i32 = arith.constant 0 : i32
    %c0_i32_0 = arith.constant 0 : i32
    %c0_i32_1 = arith.constant 0 : i32
    return %arg1, %1, %c0_i32, %c0_i32_0 : i32, i32, i32, i32
  }
  func.func @transform_2(%arg0: i32, %arg1: i32) -> (i32, i32) {
    %c0_i32 = arith.constant 0 : i32
    %c0_i32_0 = arith.constant 0 : i32
    %c0_i32_1 = arith.constant 0 : i32
    return %c0_i32, %c0_i32_0 : i32, i32
  }
  func.func @transform_3(%arg0: i32, %arg1: i32) -> (i32, i32) {
    %c0_i32 = arith.constant 0 : i32
    %c0_i32_0 = arith.constant 0 : i32
    %c0_i32_1 = arith.constant 0 : i32
    return %c0_i32, %c0_i32_0 : i32, i32
  }
  func.func @transform_4(%arg0: i32, %arg1: i32) -> (i32, i32, i32) {
    %c0_i32 = arith.constant 0 : i32
    %c0_i32_0 = arith.constant 0 : i32
    return %arg1, %arg0, %c0_i32 : i32, i32, i32
  }
}

</mosaic_0001>

<bundles_post_ra>
// kernel: tile.9
= control target key start
LH: loop header
LB: loop body
LE: loop exit
PB: predicated region body
PF: predicated region fallthrough
CT: control target
= control target key end

     0   :  { %vm8_vm0 = vcmask 31744   ;;  %s40_s8 = smov 4   ;;  %s41_s9 = smov 8   ;;  %vm14_vm1 = vcmask 130144   ;;  %vm20_vm2 = vcmask 97344   ;;  %vm26_vm3 = vcmask 64544   ;;  %s58_s0 = inlined_call_operand.vmem [shape: f32[4,4], index: 0, kind: input, shape index: {}]   ;;  %s59_s1 = inlined_call_operand.vmem [shape: f32[1,16], index: 1, kind: output, shape index: {}]  }
   0x1   :  { %v5_v0 = vld [vmem:[%s58_s0] sm:$0xf]  ;;  %s39_s0 = smov 12  }
   0x2   :  { %6 = vst [vmem:[#allocation1] sm:$0xf] %v5_v0 }
   0x9   :  { %v11_v1 = vld [vmem:[#allocation1 + $0x3] sm:$0x1]   ;;  %v23_v2 = vld [vmem:[#allocation1 + $0x1] sm:$0x1]   ;;  %v7_v3 = vld [vmem:[#allocation1] sm:$0x1]  }
   0xa   :  { %12 = vrot.lane.b32.xlu0 %v11_v1, %s39_s0  ;;  %24 = vrot.lane.b32.xlu1 %v23_v2, %s40_s8  ;;  %v17_v4 = vld [vmem:[#allocation1 + $0x2] sm:$0x1]   ;;  %9 = vst.msk [vmem:[#allocation0] sm:$0x1] %vm8_vm0, %v7_v3  }
   0xe   :  { %18 = vrot.lane.b32.xlu0 %v17_v4, %s41_s9 }
  0x7c   :  { %v13_v5 = vpop.permute.xlu0 %12   ;;  %v25_v6 = vpop.permute.xlu1 %24  }
  0x7d   :  { %15 = vst.msk [vmem:[#allocation0] sm:$0x1] %vm14_vm1, %v13_v5  }
  0x80   :  { %v19_v7 = vpop.permute.xlu0 %18  }
  0x81   :  { %21 = vst.msk [vmem:[#allocation0] sm:$0x1] %vm20_vm2, %v19_v7  }
  0x82   :  { %27 = vst.msk [vmem:[#allocation0] sm:$0x1] %vm26_vm3, %v25_v6  }
  0x89   :  { %v32_v8 = vld [vmem:[#allocation0] sm:$0x1] }
  0x8a   :  { %35 = vst [vmem:[%s59_s1] sm:$0x1] %v32_v8 }

// kernel: tile.8
= control target key start
LH: loop header
LB: loop body
LE: loop exit
PB: predicated region body
PF: predicated region fallthrough
CT: control target
= control target key end

     0   :  { %s22_s0 = inlined_call_operand.vmem [shape: f32[4], index: 0, kind: input, shape index: {}]   ;;  %s23_s1 = inlined_call_operand.vmem [shape: f32[4,4], index: 1, kind: output, shape index: {}]  }
   0x1   :  { %v4_v0 = vld [vmem:[%s22_s0] ss:$0 sm:$0xff] }
   0x2   :  { %5 = vst [vmem:[%s23_s1] sm:$0xf] %v4_v0 }

// kernel: upsample_forward.1
= control target key start
LH: loop header
LB: loop body
LE: loop exit
PB: predicated region body
PF: predicated region fallthrough
CT: control target
= control target key end

     0   :  { %s1286_s15 = smov 0   ;;  %s1288_s16 = smov 0   ;;  %s1745_s0 = inlined_call_operand.vmem [shape: f32[2,18,18,4], index: 0, kind: input, shape index: {}, may-alias: {0,1}]   ;;  %s1746_s1 = inlined_call_operand.vmem [shape: f32[2,18,18,4], index: 1, kind: input, shape index: {}, may-alias: {0,1}]   ;;  %s1747_s2 = inlined_call_operand.vmem [shape: bf16[36,16], index: 2, kind: input, shape index: {}]   ;;  %s1748_s3 = inlined_call_operand.vmem [shape: f32[1,16], index: 3, kind: input, shape index: {}]   ;;  %s1749_s4 = inlined_call_operand.vmem [shape: f32[2,256,16], index: 4, kind: output, shape index: {}]  }
   0x1   :  { %s1290_s17 = smov 0   ;;  %s1292_s18 = smov 0  }
   0x2   :  { %s1294_s19 = smov 0  }
   0x3 LB: > { %s23_s20 = sadd.s32 1, %s1243_s17  ;;  %s26_s21 = sadd.s32 1, %s1247_s18  ;;  %s1251_s19 = sphi %s1294_s19, %s14_s19   ;;  %s1247_s18 = sphi %s1292_s18, %s1754_s18   ;;  %s1243_s17 = sphi %s1290_s17, %s1753_s17   ;;  %s1239_s16 = sphi %s1288_s16, %s1752_s16   ;;  %s1235_s15 = sphi %s1286_s15, %s1751_s15  }
   0x4   : > { %p24_p0 = scmp.ge.s32.totalorder %s23_s20, 2  ;;  %p1086_p1 = scmp.ge.s32.totalorder %s1251_s19, 1 }
   0x5   : > { %p220_p2 = scmp.lt.s32.totalorder %s1251_s19, 5 }
   0x6   : > { %s1756_s20 = smov (%p24_p0, %s23_s20), 0  ;;  %s1758_s21 = smov (!%p24_p0, %s26_s21), %s1247_s18 }
   0x7   : > { %p221_p3 = pnand %p1086_p1, %p220_p2  ;;  %p28_p4 = scmp.ge.s32.totalorder %s1758_s21, 2 }
   0x8   : > { %s1319_s22 = sshll.u32 (!%p221_p3), %s1239_s16, 3  ;;  %p278_p5 = scmp.lt.s32.totalorder (!%p221_p3), %s1235_s15, 1 }
   0x9   : > { %s1760_s21 = smov (%p28_p4, %s1758_s21), 0  ;;  %224 = sbr.rel (%p221_p3) target bundleno = 468 (0x1d4), region = 36 }
   0xa   : > { %p280_p6 = scmp.lt.s32.totalorder (!%p221_p3), %s1319_s22, 17  ;;  %s1117_s5 = sadd.s32 (!%p221_p3), 8, %s1319_s22 }
   0xb   : > { %s1253_s6 = smov (!%p221_p3), 12   ;;  %p1356_p7 = scmp.lt.s32.totalorder (!%p221_p3), %s1117_s5, 17 }
   0xc   : > { %s1254_s9 = smov (!%p221_p3), 8   ;;  %s1255_s12 = smov (!%p221_p3), 4  }
   0xd   : > { %s1259_s7 = smov (!%p221_p3), 28  }
   0xe   : > { %s1762_s15 = smov (!%p278_p5, %s1235_s15), 1  ;;  %vm499_vm0 = vcmask 1046528   ;;  %s1764_s5 = smov (!%p1356_p7, %s1117_s5), 17  ;;  %vm370_vm1 = vsmask.f32 7424  ;;  %vm849_vm2 = vcmask 1041408  }
   0xf   : > { %s281_s23 = scalar_select %p280_p6, %s1319_s22, 17  ;;  %vm670_vm3 = vcmask 31744   ;;  %vm687_vm4 = vcmask 64512   ;;  %vm704_vm5 = vcmask 97280   ;;  %vm721_vm6 = vcmask 130048  }
  0x10   : > { %s1160_s24 = smul.u32 54, %s1762_s15  ;;  %vm738_vm7 = vcmask 162816   ;;  %vm755_vm8 = vcmask 195584   ;;  %vm772_vm9 = vcmask 228352   ;;  %vm789_vm10 = vcmask 261120  }
  0x11   : > { %s1159_s25 = smul.u32 3, %s281_s23  ;;  %s1256_s23 = smov 16   ;;  %vm832_vm11 = vcmask 293888  }
  0x12   : > { %s1161_s8 = smul.u32 3, %s1764_s5 }
  0x13   : > { %s284_s26 = sadd.s32 %s1160_s24, %s1159_s25 }
  0x14   : > { %s1088_s27 = sshll.u32 %s284_s26, 3  ;;  %s302_s10 = sadd.s32 %s1161_s8, %s1160_s24 }
  0x15   : > { %s1331_s30 = scalar_lea.vmem %s1745_s0, %s1088_s27  ;;  %s1091_s11 = sshll.u32 %s302_s10, 3 }
  0x16   : > { %v334_v0 = vld [vmem:[%s1331_s30 + $0x78] sm:$0xff]  ;;  %v335_v1 = vld [vmem:[%s1331_s30 + $0x80] sm:$0xff]  ;;  %v337_v5 = vld [vmem:[%s1331_s30 + $0x90] sm:$0xff]  ;;  %s304_s22 = scalar_lea.vmem %s1746_s1, %s1091_s11  ;;  %s1257_s24 = smov 20  }
  0x17   : > { %v322_v2 = vld [vmem:[%s1331_s30 + $0x18] sm:$0xff]  ;;  %v1337_v3 = vpack.c.bf16 %v335_v1, %v334_v0  ;;  %v323_v4 = vld [vmem:[%s1331_s30 + $0x20] sm:$0xff]  ;;  %v325_v8 = vld [vmem:[%s1331_s30 + $0x30] sm:$0xff]  ;;  %s1258_s27 = smov 24   ;;  %s1260_s8 = smov 32  }
  0x18   : > { %v338_v6 = vld [vmem:[%s1331_s30 + $0x98] sm:$0xff]  ;;  %v1342_v7 = vpack.c.bf16 %v323_v4, %v322_v2  ;;  %v331_v10 = vld [vmem:[%s1331_s30 + $0x60] sm:$0xff]  ;;  %v332_v12 = vld [vmem:[%s1331_s30 + $0x68] sm:$0xff] }
  0x19   : > { %v326_v9 = vld [vmem:[%s1331_s30 + $0x38] sm:$0xff]  ;;  %549 = vrot.lane.b32.xlu1 %v1337_v3, %s1253_s6  ;;  %v1349_v11 = vpack.c.bf16 %v338_v6, %v337_v5  ;;  %v333_v13 = vld [vmem:[%s1331_s30 + $0x70] sm:$0x3]  ;;  %v319_v14 = vld [vmem:[%s1331_s30] sm:$0xff]  ;;  %v1364_v16 = vpack.c.bf16 %v332_v12, %v331_v10  ;;  %v515_v21 = vrot.slane %v1337_v3, 1  ;;  %v432_v43 = vshrl.u32 %v1337_v3, 16 }
  0x1a   : > { %541 = vrot.lane.b32.xlu0 %v1342_v7, %s1253_s6  ;;  %v1362_v15 = vpack.c.bf16 %v326_v9, %v325_v8  ;;  %v1366_v17 = vpack.c.bf16 %v333_v13, %v333_v13  ;;  %v320_v18 = vld [vmem:[%s1331_s30 + $0x8] sm:$0xff]  ;;  %v321_v19 = vld [vmem:[%s1331_s30 + $0x10] sm:$0x3]  ;;  %v503_v26 = vrot.slane %v1342_v7, 1  ;;  %v386_v30 = vshll.u32 %v1342_v7, 16 }
  0x1b   : > { %v336_v20 = vld [vmem:[%s1331_s30 + $0x88] sm:$0x3]  ;;  %v1372_v22 = vpack.c.bf16 %v320_v18, %v319_v14  ;;  %v358_v23 = vpack.c.bf16 %v321_v19, %v321_v19  ;;  %v512_v27 = vrot.slane %v1364_v16, 1  ;;  %v384_v34 = vshrl.u32 %v1342_v7, 16  ;;  %v339_v53 = vld [vmem:[%s1331_s30 + $0xa0] sm:$0x3] }
  0x1c   : > { %v363_v24 = vpack.c.bf16 %v336_v20, %v336_v20  ;;  %v324_v25 = vld [vmem:[%s1331_s30 + $0x28] sm:$0x3]  ;;  %v513_v28 = vrot.slane %v1366_v17, 1  ;;  %v388_v37 = vrot.slane %v386_v30, 1  ;;  %v434_v44 = vshll.u32 %v1337_v3, 16  ;;  %v343_v19 = vld [vmem:[%s304_s22] sm:$0xff] }
  0x1d   : > { %v359_v29 = vpack.c.bf16 %v324_v25, %v324_v25  ;;  %551 = vrot.lane.b32.xlu1 %v1349_v11, %s1253_s6  ;;  %v500_v31 = vrot.slane %v1372_v22, 1  ;;  %v501_v32 = vrot.slane %v358_v23, 1  ;;  %v372_v40 = vshrl.u32 %v1372_v22, 16  ;;  %v327_v58 = vld [vmem:[%s1331_s30 + $0x40] sm:$0x3]  ;;  %v344_v20 = vld [vmem:[%s304_s22 + $0x8] sm:$0xff] }
  0x1e   : > { %v516_v33 = vrot.slane %v363_v24, 1  ;;  %543 = vrot.lane.b32.xlu0 %v1362_v15, %s1253_s6  ;;  %v1386_v35 = vsel %vm499_vm0, %v512_v27, %v513_v28  ;;  %v374_v41 = vshll.u32 %v1372_v22, 16  ;;  %v379_v42 = vshll.u32 %v358_v23, 16  ;;  %v346_v25 = vld [vmem:[%s304_s22 + $0x18] sm:$0xff]  ;;  %v348_v30 = vld [vmem:[%s304_s22 + $0x28] sm:$0x3] }
  0x1f   : > { %v504_v36 = vrot.slane %v359_v29, 1  ;;  %v391_v38 = vshll.u32 %v359_v29, 16  ;;  %v502_v39 = vsel %vm499_vm0, %v500_v31, %v501_v32  ;;  %v389_v46 = vor.u32 %v388_v37, %v384_v34 }
  0x20   : > { %v1400_v45 = vsel %vm499_vm0, %v515_v21, %v516_v33  ;;  %v376_v48 = vrot.slane %v374_v41, 1  ;;  %v436_v50 = vrot.slane %v434_v44, 1  ;;  %v439_v51 = vshll.u32 %v363_v24, 16  ;;  %v345_v24 = vld [vmem:[%s304_s22 + $0x10] sm:$0x3] }
  0x21   : > { %532 = vrot.lane.b32.xlu1 %v1386_v35, %s1254_s9  ;;  %v393_v47 = vrot.slane %v391_v38, 1  ;;  %v1404_v49 = vsel %vm499_vm0, %v503_v26, %v504_v36  ;;  %v422_v52 = vshll.u32 %v1364_v16, 16  ;;  %v381_v55 = vrot.slane %v379_v42, 1  ;;  %v347_v26 = vld [vmem:[%s304_s22 + $0x20] sm:$0xff] }
  0x22   : > { %524 = vrot.lane.b32.xlu0 %v502_v39, %s1254_s9  ;;  %v377_v54 = vor.u32 %v376_v48, %v372_v40  ;;  %v420_v56 = vshrl.u32 %v1364_v16, 16  ;;  %v427_v57 = vshll.u32 %v1366_v17, 16  ;;  %v1416_v61 = vpack.c.bf16 %v339_v53, %v339_v53 }
  0x23   : > { %v424_v59 = vrot.slane %v422_v52, 1  ;;  %v394_v60 = vsel %vm370_vm1, %v389_v46, %v393_v47  ;;  %v446_v62 = vshll.u32 %v1349_v11, 16  ;;  %v437_v63 = vor.u32 %v436_v50, %v432_v43 }
  0x24   : > { %v441_v0 = vrot.slane %v439_v51, 1  ;;  %v1421_v1 = vpack.c.bf16 %v327_v58, %v327_v58  ;;  %v398_v2 = vshll.u32 %v1362_v15, 16  ;;  %v382_v4 = vsel %vm370_vm1, %v377_v54, %v381_v55 }
  0x25   : > { %534 = vrot.lane.b32.xlu1 %v1400_v45, %s1254_s9  ;;  %v425_v5 = vor.u32 %v424_v59, %v420_v56  ;;  %v429_v6 = vrot.slane %v427_v57, 1  ;;  %v444_v8 = vshrl.u32 %v1349_v11, 16  ;;  %v448_v9 = vrot.slane %v446_v62, 1  ;;  %v341_v62 = vld [vmem:[%s1331_s30 + $0xb0] sm:$0xff] }
  0x26   : > { %526 = vrot.lane.b32.xlu0 %v1404_v49, %s1254_s9  ;;  %v451_v10 = vshll.u32 %v1416_v61, 16  ;;  %v1433_v12 = vsel %vm370_vm1, %v437_v63, %v441_v0  ;;  %v396_v13 = vshrl.u32 %v1362_v15, 16  ;;  %v400_v14 = vrot.slane %v398_v2, 1  ;;  %v328_v2 = vld [vmem:[%s1331_s30 + $0x48] sm:$0xff] }
  0x27   : > { %v403_v17 = vshll.u32 %v1421_v1, 16  ;;  %v1438_v18 = vsel %vm370_vm1, %v425_v5, %v429_v6  ;;  %v449_v21 = vor.u32 %v448_v9, %v444_v8  ;;  %v1444_v29 = vpack.c.bf16 %v344_v20, %v343_v19  ;;  %v342_v9 = vld [vmem:[%s1331_s30 + $0xb8] sm:$0x3]  ;;  %v1210_v19 = vld [vmem:[%s1747_s2 + $0x10] ss:$0 sps:$4 sm:$0x33]  }
  0x28   : > { %v453_v23 = vrot.slane %v451_v10, 1  ;;  %v401_v27 = vor.u32 %v400_v14, %v396_v13  ;;  %v367_v31 = vpack.c.bf16 %v345_v24, %v345_v24  ;;  %v1446_v32 = vpack.c.bf16 %v347_v26, %v346_v25  ;;  %v330_v10 = vld [vmem:[%s1331_s30 + $0x58] sm:$0x3]  ;;  %1157 = vmatprep.subr.msk.bf16.mxu0 %vm849_vm2, %v1210_v19  ;;  %1158 = vmatprep.subr.msk.bf16.mxu1 %vm849_vm2, %v1210_v19 }
  0x29   : > { %469 = vrot.lane.b32.xlu1 %v394_v60, %s1255_s12  ;;  %v405_v28 = vrot.slane %v403_v17, 1  ;;  %v558_v34 = vshrl.u32 %v1444_v29, 16  ;;  %v560_v36 = vshll.u32 %v1444_v29, 16  ;;  %v586_v37 = vrot.slane %v1444_v29, 1 }
  0x2a   : > { %467 = vrot.lane.b32.xlu0 %v382_v4, %s1255_s12  ;;  %v1451_v33 = vsel %vm370_vm1, %v449_v21, %v453_v23  ;;  %v565_v39 = vshll.u32 %v367_v31, 16  ;;  %v587_v40 = vrot.slane %v367_v31, 1  ;;  %v369_v41 = vpack.c.bf16 %v348_v30, %v348_v30  ;;  %v329_v4 = vld [vmem:[%s1331_s30 + $0x50] sm:$0xff] }
  0x2b   : > { %v1458_v38 = vsel %vm370_vm1, %v401_v27, %v405_v28  ;;  %v562_v42 = vrot.slane %v560_v36, 1  ;;  %v623_v43 = vshrl.u32 %v1446_v32, 16  ;;  %v625_v44 = vshll.u32 %v1446_v32, 16  ;;  %v1211_v28 = vld [vmem:[%s1747_s2 + $0x8] sm:$0xff]  }
  0x2c   : > { %v651_v46 = vrot.slane %v1446_v32, 1  ;;  %v567_v47 = vrot.slane %v565_v39, 1  ;;  %v1464_v48 = vsel %vm499_vm0, %v586_v37, %v587_v40  ;;  %v630_v50 = vshll.u32 %v369_v41, 16  ;;  %v1212_v37 = vld [vmem:[%s1747_s2] sm:$0xff]  }
  0x2d   : > { %477 = vrot.lane.b32.xlu1 %v1433_v12, %s1255_s12  ;;  %v652_v51 = vrot.slane %v369_v41, 1  ;;  %v563_v52 = vor.u32 %v562_v42, %v558_v34  ;;  %v627_v53 = vrot.slane %v625_v44, 1  ;;  %v518_v54 = vrot.slane %v1349_v11, 1 }
  0x2e   : > { %475 = vrot.lane.b32.xlu0 %v1438_v18, %s1255_s12  ;;  %v519_v55 = vrot.slane %v1416_v61, 1  ;;  %v632_v56 = vrot.slane %v630_v50, 1  ;;  %v506_v58 = vrot.slane %v1362_v15, 1  ;;  %v507_v59 = vrot.slane %v1421_v1, 1 }
  0x2f   : > { %v1473_v57 = vsel %vm499_vm0, %v651_v46, %v652_v51  ;;  %v1480_v63 = vsel %vm370_vm1, %v563_v52, %v567_v47  ;;  %v628_v0 = vor.u32 %v627_v53, %v623_v43  ;;  %v1499_v8 = vpack.c.bf16 %v329_v4, %v328_v2 }
  0x30   : > { %v1492_v1 = vsel %vm499_vm0, %v518_v54, %v519_v55  ;;  %v1497_v6 = vsel %vm499_vm0, %v506_v58, %v507_v59  ;;  %v365_v13 = vpack.c.bf16 %v342_v9, %v342_v9  ;;  %v361_v14 = vpack.c.bf16 %v330_v10, %v330_v10 }
  0x31   : > { %577 = vrot.lane.b32.xlu1 %v1433_v12, %s1256_s23  ;;  %v1487_v61 = vsel %vm370_vm1, %v628_v0, %v632_v56  ;;  %v410_v17 = vshll.u32 %v1499_v8, 16  ;;  %v851_v24 = vsel %vm849_vm2, %v1210_v19, 0  ;;  %v408_v25 = vshrl.u32 %v1499_v8, 16 }
  0x32   : > { %569 = vrot.lane.b32.xlu0 %v394_v60, %s1256_s23  ;;  %v340_v60 = vld [vmem:[%s1331_s30 + $0xa8] sm:$0xff]  ;;  %v463_v23 = vshll.u32 %v365_v13, 16  ;;  %v415_v27 = vshll.u32 %v361_v14, 16  ;;  %1130 = vmatpush3.bf16.msra.mxu0 %v851_v24  ;;  %v522_v42 = vrot.slane %v365_v13, 1  ;;  %v509_v43 = vrot.slane %v1499_v8, 1 }
  0x33   : > { %v1494_v5 = vpack.c.bf16 %v341_v62, %v340_v60  ;;  %v412_v26 = vrot.slane %v410_v17, 1  ;;  %1154 = vmatpush3.bf16.msra.mxu1 %v851_v24  ;;  %1131 = vmatprep.subr.bf16.mxu0 %v1211_v28  ;;  %v510_v44 = vrot.slane %v361_v14, 1 }
  0x34   : > { %v465_v31 = vrot.slane %v463_v23, 1  ;;  %v417_v36 = vrot.slane %v415_v27, 1  ;;  %1152 = vmatprep.subr.bf16.mxu1 %v1211_v28 }
  0x35   : > { %579 = vrot.lane.b32.xlu1 %v1451_v33, %s1256_s23  ;;  %v456_v20 = vshrl.u32 %v1494_v5, 16  ;;  %v413_v34 = vor.u32 %v412_v26, %v408_v25  ;;  %v521_v41 = vrot.slane %v1494_v5, 1  ;;  %v511_v47 = vsel %vm499_vm0, %v509_v43, %v510_v44 }
  0x36   : > { %571 = vrot.lane.b32.xlu0 %v1458_v38, %s1256_s23  ;;  %1132 = vmatpush3.bf16.msra.mxu0 %v1211_v28 }
  0x37   : > { %1155 = vmatpush3.bf16.msra.mxu1 %v1211_v28  ;;  %1133 = vmatprep.subr.bf16.mxu0 %v1212_v37  ;;  %v418_v40 = vsel %vm370_vm1, %v413_v34, %v417_v36  ;;  %v523_v46 = vsel %vm499_vm0, %v521_v41, %v522_v42 }
  0x38   : > { %1153 = vmatprep.subr.bf16.mxu1 %v1212_v37 }
  0x39   : > { %597 = vrot.lane.b32.xlu1 %v1400_v45, %s1257_s24 }
  0x3a   : > { %589 = vrot.lane.b32.xlu0 %v1404_v49, %s1257_s24  ;;  %v458_v49 = vshll.u32 %v1494_v5, 16  ;;  %1134 = vmatpush3.bf16.msra.mxu0 %v1212_v37 }
  0x3b   : > { %1156 = vmatpush3.bf16.msra.mxu1 %v1212_v37 }
  0x3c   : > { %v460_v21 = vrot.slane %v458_v49, 1 }
  0x3d   : > { %599 = vrot.lane.b32.xlu1 %v1492_v1, %s1257_s24 }
  0x3e   : > { %591 = vrot.lane.b32.xlu0 %v1497_v6, %s1257_s24  ;;  %v461_v30 = vor.u32 %v460_v21, %v456_v20 }
  0x40   : > { %v466_v39 = vsel %vm370_vm1, %v461_v30, %v465_v31 }
  0x41   : > { %614 = vrot.lane.b32.xlu1 %v1349_v11, %s1258_s27 }
  0x42   : > { %606 = vrot.lane.b32.xlu0 %v1362_v15, %s1258_s27 }
  0x45   : > { %616 = vrot.lane.b32.xlu1 %v1494_v5, %s1258_s27 }
  0x46   : > { %608 = vrot.lane.b32.xlu0 %v1499_v8, %s1258_s27 }
  0x49   : > { %642 = vrot.lane.b32.xlu1 %v1451_v33, %s1259_s7 }
  0x4a   : > { %634 = vrot.lane.b32.xlu0 %v1458_v38, %s1259_s7 }
  0x4d   : > { %644 = vrot.lane.b32.xlu1 %v466_v39, %s1259_s7 }
  0x4e   : > { %636 = vrot.lane.b32.xlu0 %v418_v40, %s1259_s7 }
  0x51   : > { %662 = vrot.lane.b32.xlu1 %v1492_v1, %s1260_s8 }
  0x52   : > { %654 = vrot.lane.b32.xlu0 %v1497_v6, %s1260_s8 }
  0x55   : > { %479 = vrot.lane.b32.xlu1 %v1451_v33, %s1255_s12 }
  0x56   : > { %471 = vrot.lane.b32.xlu0 %v1458_v38, %s1255_s12 }
  0x59   : > { %664 = vrot.lane.b32.xlu1 %v523_v46, %s1260_s8 }
  0x5a   : > { %656 = vrot.lane.b32.xlu0 %v511_v47, %s1260_s8 }
  0x5d   : > { %481 = vrot.lane.b32.xlu1 %v466_v39, %s1255_s12 }
  0x5e   : > { %473 = vrot.lane.b32.xlu0 %v418_v40, %s1255_s12 }
  0x61   : > { %536 = vrot.lane.b32.xlu1 %v1492_v1, %s1254_s9 }
  0x62   : > { %528 = vrot.lane.b32.xlu0 %v1497_v6, %s1254_s9 }
  0x65   : > { %538 = vrot.lane.b32.xlu1 %v523_v46, %s1254_s9 }
  0x66   : > { %530 = vrot.lane.b32.xlu0 %v511_v47, %s1254_s9  ;;  %s1093_s9 = sshll.u32 %s1762_s15, 5 }
  0x69   : > { %553 = vrot.lane.b32.xlu1 %v1494_v5, %s1253_s6 }
  0x6a   : > { %545 = vrot.lane.b32.xlu0 %v1499_v8, %s1253_s6 }
  0x6d   : > { %555 = vrot.lane.b32.xlu1 %v1444_v29, %s1253_s6 }
  0x6e   : > { %547 = vrot.lane.b32.xlu0 %v1364_v16, %s1253_s6  ;;  %s1092_s6 = sshll.u32 %s1239_s16, 4 }
  0x6f   : > { %p311_p8 = scmp.lt.s32.totalorder %s1092_s6, 31 }
  0x71   : > { %581 = vrot.lane.b32.xlu1 %v466_v39, %s1256_s23  ;;  %s1766_s6 = smov (!%p311_p8, %s1092_s6), 31 }
  0x72   : > { %573 = vrot.lane.b32.xlu0 %v418_v40, %s1256_s23  ;;  %s314_s10 = sadd.s32 %s1093_s9, %s1766_s6 }
  0x73   : > { %s1094_s11 = sshll.u32 %s314_s10, 3 }
  0x75   : > { %583 = vrot.lane.b32.xlu1 %v1480_v63, %s1256_s23 }
  0x76   : > { %575 = vrot.lane.b32.xlu0 %v1438_v18, %s1256_s23  ;;  %s1696_s23 = scalar_lea.vmem %s1749_s4, %s1094_s11 }
  0x79   : > { %601 = vrot.lane.b32.xlu1 %v523_v46, %s1257_s24 }
  0x7a   : > { %593 = vrot.lane.b32.xlu0 %v511_v47, %s1257_s24 }
  0x7d   : > { %603 = vrot.lane.b32.xlu1 %v1464_v48, %s1257_s24 }
  0x7e   : > { %595 = vrot.lane.b32.xlu0 %v1386_v35, %s1257_s24 }
  0x81   : > { %618 = vrot.lane.b32.xlu1 %v1444_v29, %s1258_s27 }
  0x82   : > { %610 = vrot.lane.b32.xlu0 %v1364_v16, %s1258_s27 }
  0x85   : > { %620 = vrot.lane.b32.xlu1 %v1446_v32, %s1258_s27 }
  0x86   : > { %612 = vrot.lane.b32.xlu0 %v1337_v3, %s1258_s27 }
  0x89   : > { %646 = vrot.lane.b32.xlu1 %v1480_v63, %s1259_s7 }
  0x8a   : > { %638 = vrot.lane.b32.xlu0 %v1438_v18, %s1259_s7 }
  0x8b   : > { %v550_v33 = vpop.permute.xlu1 %549 }
  0x8c   : > { %v542_v38 = vpop.permute.xlu0 %541 }
  0x8d   : > { %648 = vrot.lane.b32.xlu1 %v1487_v61, %s1259_s7 }
  0x8e   : > { %640 = vrot.lane.b32.xlu0 %v1433_v12, %s1259_s7 }
  0x8f   : > { %v1594_v29 = vpop.permute.xlu1 %551 }
  0x90   : > { %v1596_v32 = vpop.permute.xlu0 %543 }
  0x91   : > { %666 = vrot.lane.b32.xlu1 %v1464_v48, %s1260_s8 }
  0x92   : > { %658 = vrot.lane.b32.xlu0 %v1386_v35, %s1260_s8 }
  0x93   : > { %v533_v50 = vpop.permute.xlu1 %532 }
  0x94   : > { %v525_v18 = vpop.permute.xlu0 %524 }
  0x95   : > { %668 = vrot.lane.b32.xlu1 %v1473_v57, %s1260_s8 }
  0x96   : > { %660 = vrot.lane.b32.xlu0 %v1400_v45, %s1260_s8 }
  0x97   : > { %v535_v51 = vpop.permute.xlu1 %534 }
  0x98   : > { %v527_v12 = vpop.permute.xlu0 %526 }
  0x9b   : > { %v470_v52 = vpop.permute.xlu1 %469 }
  0x9c   : > { %v468_v53 = vpop.permute.xlu0 %467  ;;  %v674_v21 = vsel %vm670_vm3, %v1342_v7, %v470_v52 }
  0x9d   : > { %v672_v61 = vsel %vm670_vm3, %v1372_v22, %v468_v53  ;;  %v691_v34 = vsel %vm687_vm4, %v674_v21, %v527_v12 }
  0x9e   : > { %v689_v10 = vsel %vm687_vm4, %v672_v61, %v525_v18  ;;  %v708_v40 = vsel %vm704_vm5, %v691_v34, %v1596_v32 }
  0x9f   : > { %v478_v54 = vpop.permute.xlu1 %477  ;;  %v706_v14 = vsel %vm704_vm5, %v689_v10, %v542_v38 }
  0xa0   : > { %v476_v55 = vpop.permute.xlu0 %475  ;;  %v682_v22 = vsel %vm670_vm3, %v1337_v3, %v478_v54 }
  0xa1   : > { %v680_v45 = vsel %vm670_vm3, %v1364_v16, %v476_v55  ;;  %v699_v3 = vsel %vm687_vm4, %v682_v22, %v535_v51 }
  0xa2   : > { %v697_v1 = vsel %vm687_vm4, %v680_v45, %v533_v50  ;;  %v716_v36 = vsel %vm704_vm5, %v699_v3, %v1594_v29 }
  0xa3   : > { %v578_v56 = vpop.permute.xlu1 %577  ;;  %v714_v13 = vsel %vm704_vm5, %v697_v1, %v550_v33 }
  0xa4   : > { %v570_v58 = vpop.permute.xlu0 %569  ;;  %v731_v16 = vsel %vm721_vm6, %v714_v13, %v578_v56 }
  0xa5   : > { %v723_v19 = vsel %vm721_vm6, %v706_v14, %v570_v58 }
  0xa7   : > { %v580_v48 = vpop.permute.xlu1 %579 }
  0xa8   : > { %v572_v59 = vpop.permute.xlu0 %571  ;;  %v733_v39 = vsel %vm721_vm6, %v716_v36, %v580_v48 }
  0xa9   : > { %v725_v42 = vsel %vm721_vm6, %v708_v40, %v572_v59 }
  0xab   : > { %v598_v60 = vpop.permute.xlu1 %597 }
  0xac   : > { %v590_v35 = vpop.permute.xlu0 %589  ;;  %v748_v20 = vsel %vm738_vm7, %v731_v16, %v598_v60 }
  0xad   : > { %v740_v23 = vsel %vm738_vm7, %v723_v19, %v590_v35 }
  0xaf   : > { %v600_v62 = vpop.permute.xlu1 %599 }
  0xb0   : > { %v592_v63 = vpop.permute.xlu0 %591  ;;  %v750_v43 = vsel %vm738_vm7, %v733_v39, %v600_v62 }
  0xb1   : > { %v742_v44 = vsel %vm738_vm7, %v725_v42, %v592_v63 }
  0xb3   : > { %v615_v0 = vpop.permute.xlu1 %614 }
  0xb4   : > { %v607_v2 = vpop.permute.xlu0 %606  ;;  %v765_v24 = vsel %vm755_vm8, %v748_v20, %v615_v0 }
  0xb5   : > { %v757_v25 = vsel %vm755_vm8, %v740_v23, %v607_v2 }
  0xb7   : > { %v617_v57 = vpop.permute.xlu1 %616 }
  0xb8   : > { %v609_v4 = vpop.permute.xlu0 %608  ;;  %v767_v46 = vsel %vm755_vm8, %v750_v43, %v617_v57 }
  0xb9   : > { %v759_v47 = vsel %vm755_vm8, %v742_v44, %v609_v4 }
  0xbb   : > { %v643_v6 = vpop.permute.xlu1 %642 }
  0xbc   : > { %v635_v9 = vpop.permute.xlu0 %634  ;;  %v782_v26 = vsel %vm772_vm9, %v765_v24, %v643_v6 }
  0xbd   : > { %v774_v28 = vsel %vm772_vm9, %v757_v25, %v635_v9 }
  0xbf   : > { %v645_v49 = vpop.permute.xlu1 %644 }
  0xc0   : > { %v637_v17 = vpop.permute.xlu0 %636  ;;  %v784_v33 = vsel %vm772_vm9, %v767_v46, %v645_v49 }
  0xc1   : > { %v776_v29 = vsel %vm772_vm9, %v759_v47, %v637_v17 }
  0xc3   : > { %v663_v27 = vpop.permute.xlu1 %662 }
  0xc4   : > { %v655_v30 = vpop.permute.xlu0 %654  ;;  %v799_v31 = vsel %vm789_vm10, %v782_v26, %v663_v27 }
  0xc5   : > { %v791_v7 = vsel %vm789_vm10, %v774_v28, %v655_v30  ;;  %1143 = vmatprep.mubr.msk.bf16.mxu1 %vm832_vm11, %v799_v31 }
  0xc6   : > { %1135 = vmatprep.mubr.msk.bf16.mxu0 %vm832_vm11, %v791_v7 }
  0xc7   : > { %v480_v37 = vpop.permute.xlu1 %479 }
  0xc8   : > { %v472_v41 = vpop.permute.xlu0 %471  ;;  %v684_v52 = vsel %vm670_vm3, %v1349_v11, %v480_v37 }
  0xc9   : > { %v676_v54 = vsel %vm670_vm3, %v1362_v15, %v472_v41 }
  0xcb   : > { %v665_v38 = vpop.permute.xlu1 %664 }
  0xcc   : > { %v801_v50 = vsel %vm789_vm10, %v784_v33, %v665_v38  ;;  %v657_v18 = vpop.permute.xlu0 %656 }
  0xcd   : > { %v793_v32 = vsel %vm789_vm10, %v776_v29, %v657_v18  ;;  %1144 = vmatmul.mubr.msk.bf16.vlgmr.msra.gmra.mxu1 %vm832_vm11, %v801_v50  ;;  %v1095_v18 = vld [vmem:[%s1748_s3] ss:$0 sm:$0xff] }
  0xce   : > { %1136 = vmatmul.mubr.msk.bf16.vlgmr.msra.gmra.mxu0 %vm832_vm11, %v793_v32 }
  0xcf   : > { %v482_v51 = vpop.permute.xlu1 %481 }
  0xd0   : > { %v474_v12 = vpop.permute.xlu0 %473  ;;  %v686_v48 = vsel %vm670_vm3, %v1494_v5, %v482_v51 }
  0xd1   : > { %v678_v60 = vsel %vm670_vm3, %v1499_v8, %v474_v12 }
  0xd3   : > { %v537_v53 = vpop.permute.xlu1 %536 }
  0xd4   : > { %v701_v55 = vsel %vm687_vm4, %v684_v52, %v537_v53  ;;  %v529_v56 = vpop.permute.xlu0 %528 }
  0xd5   : > { %v693_v58 = vsel %vm687_vm4, %v676_v54, %v529_v56 }
  0xd7   : > { %v539_v59 = vpop.permute.xlu1 %538 }
  0xd8   : > { %v703_v35 = vsel %vm687_vm4, %v686_v48, %v539_v59  ;;  %v531_v62 = vpop.permute.xlu0 %530 }
  0xd9   : > { %v695_v11 = vsel %vm687_vm4, %v678_v60, %v531_v62 }
  0xdb   : > { %v554_v63 = vpop.permute.xlu1 %553 }
  0xdc   : > { %v546_v0 = vpop.permute.xlu0 %545  ;;  %v718_v17 = vsel %vm704_vm5, %v701_v55, %v554_v63 }
  0xdd   : > { %v710_v19 = vsel %vm704_vm5, %v693_v58, %v546_v0 }
  0xdf   : > { %v556_v15 = vpop.permute.xlu1 %555 }
  0xe0   : > { %v548_v2 = vpop.permute.xlu0 %547  ;;  %v720_v27 = vsel %vm704_vm5, %v703_v35, %v556_v15 }
  0xe1   : > { %v712_v31 = vsel %vm704_vm5, %v695_v11, %v548_v2 }
  0xe3   : > { %v582_v45 = vpop.permute.xlu1 %581 }
  0xe4   : > { %v574_v57 = vpop.permute.xlu0 %573  ;;  %v735_v20 = vsel %vm721_vm6, %v718_v17, %v582_v45 }
  0xe5   : > { %v727_v23 = vsel %vm721_vm6, %v710_v19, %v574_v57 }
  0xe7   : > { %v584_v4 = vpop.permute.xlu1 %583 }
  0xe8   : > { %v576_v61 = vpop.permute.xlu0 %575  ;;  %v737_v34 = vsel %vm721_vm6, %v720_v27, %v584_v4 }
  0xe9   : > { %v729_v39 = vsel %vm721_vm6, %v712_v31, %v576_v61 }
  0xeb   : > { %v602_v1 = vpop.permute.xlu1 %601 }
  0xec   : > { %v594_v6 = vpop.permute.xlu0 %593  ;;  %v752_v24 = vsel %vm738_vm7, %v735_v20, %v602_v1 }
  0xed   : > { %v744_v25 = vsel %vm738_vm7, %v727_v23, %v594_v6 }
  0xef   : > { %v604_v5 = vpop.permute.xlu1 %603 }
  0xf0   : > { %v596_v9 = vpop.permute.xlu0 %595  ;;  %v754_v40 = vsel %vm738_vm7, %v737_v34, %v604_v5 }
  0xf1   : > { %v746_v42 = vsel %vm738_vm7, %v729_v39, %v596_v9 }
  0xf3   : > { %v619_v10 = vpop.permute.xlu1 %618 }
  0xf4   : > { %v611_v13 = vpop.permute.xlu0 %610  ;;  %v769_v26 = vsel %vm755_vm8, %v752_v24, %v619_v10 }
  0xf5   : > { %v761_v3 = vsel %vm755_vm8, %v744_v25, %v611_v13 }
  0xf7   : > { %v621_v8 = vpop.permute.xlu1 %620 }
  0xf8   : > { %v613_v49 = vpop.permute.xlu0 %612  ;;  %v771_v43 = vsel %vm755_vm8, %v754_v40, %v621_v8 }
  0xf9   : > { %v763_v44 = vsel %vm755_vm8, %v746_v42, %v613_v49 }
  0xfb   : > { %v647_v16 = vpop.permute.xlu1 %646 }
  0xfc   : > { %v639_v14 = vpop.permute.xlu0 %638  ;;  %v786_v28 = vsel %vm772_vm9, %v769_v26, %v647_v16 }
  0xfd   : > { %v778_v7 = vsel %vm772_vm9, %v761_v3, %v639_v14 }
  0xff   : > { %v649_v22 = vpop.permute.xlu1 %648 }
 0x100   : > { %v641_v21 = vpop.permute.xlu0 %640  ;;  %v788_v46 = vsel %vm772_vm9, %v771_v43, %v649_v22 }
 0x101   : > { %v780_v33 = vsel %vm772_vm9, %v763_v44, %v641_v21 }
 0x103   : > { %v667_v30 = vpop.permute.xlu1 %666 }
 0x104   : > { %v803_v36 = vsel %vm789_vm10, %v786_v28, %v667_v30  ;;  %v659_v37 = vpop.permute.xlu0 %658 }
 0x105   : > { %v795_v41 = vsel %vm789_vm10, %v778_v7, %v659_v37  ;;  %1147 = vmatprep.mubr.msk.bf16.mxu1 %vm832_vm11, %v803_v36 }
 0x106   : > { %1139 = vmatprep.mubr.msk.bf16.mxu0 %vm832_vm11, %v795_v41 }
 0x107   : > { %v669_v47 = vpop.permute.xlu1 %668 }
 0x108   : > { %v805_v38 = vsel %vm789_vm10, %v788_v46, %v669_v47  ;;  %v661_v29 = vpop.permute.xlu0 %660 }
 0x109   : > { %v797_v50 = vsel %vm789_vm10, %v780_v33, %v661_v29  ;;  %1148 = vmatmul.mubr.msk.bf16.gmra.mxu1 %vm832_vm11, %v805_v38 }
 0x10a   : > { %1140 = vmatmul.mubr.msk.bf16.gmra.mxu0 %vm832_vm11, %v797_v50 }
 0x18d   : > { %v1145_v32 = vpop.f32.mrf.mxu1 }
 0x18e   : > { %v1137_v51 = vpop.f32.mrf.mxu0  ;;  %v928_v12 = vadd.f32 %v1145_v32, %v1095_v18 }
 0x18f   : > { %v896_v52 = vadd.f32 %v1137_v51, %v1095_v18  ;;  %v919_v53 = vpop.f32.mrf.mxu1 }
 0x190   : > { %960 = vst.msk [vmem:[%s1696_s23 + $0x50] sm:$0xff] %vm721_vm6, %v928_v12  ;;  %v887_v54 = vpop.f32.mrf.mxu0  ;;  %v920_v55 = vadd.f32 %v1095_v18, %v919_v53 }
 0x191   : > { %952 = vst.msk [vmem:[%s1696_s23 + $0x10] sm:$0xff] %vm721_vm6, %v896_v52  ;;  %v888_v56 = vadd.f32 %v1095_v18, %v887_v54  ;;  %v1146_v58 = vpop.f32.mrf.mxu1 }
 0x192   : > { %958 = vst.msk [vmem:[%s1696_s23 + $0x40] sm:$0xff] %vm721_vm6, %v920_v55  ;;  %v1138_v48 = vpop.f32.mrf.mxu0  ;;  %v931_v59 = vadd.f32 %v1146_v58, %v1095_v18 }
 0x193   : > { %950 = vst.msk [vmem:[%s1696_s23] sm:$0xff] %vm721_vm6, %v888_v56  ;;  %v899_v60 = vadd.f32 %v1138_v48, %v1095_v18  ;;  %v922_v35 = vpop.f32.mrf.mxu1 }
 0x194   : > { %961 = vst.msk [vmem:[%s1696_s23 + $0x58] sm:$0xff] %vm721_vm6, %v931_v59  ;;  %v890_v62 = vpop.f32.mrf.mxu0  ;;  %v923_v11 = vadd.f32 %v1095_v18, %v922_v35 }
 0x195   : > { %953 = vst.msk [vmem:[%s1696_s23 + $0x18] sm:$0xff] %vm721_vm6, %v899_v60  ;;  %v891_v63 = vadd.f32 %v1095_v18, %v890_v62 }
 0x196   : > { %959 = vst.msk [vmem:[%s1696_s23 + $0x48] sm:$0xff] %vm721_vm6, %v923_v11 }
 0x197   : > { %951 = vst.msk [vmem:[%s1696_s23 + $0x8] sm:$0xff] %vm721_vm6, %v891_v63 }
 0x1c9   : > { %v1149_v0 = vpop.f32.mrf.mxu1 }
 0x1ca   : > { %v1141_v15 = vpop.f32.mrf.mxu0  ;;  %v944_v2 = vadd.f32 %v1149_v0, %v1095_v18 }
 0x1cb   : > { %v912_v45 = vadd.f32 %v1141_v15, %v1095_v18  ;;  %v935_v57 = vpop.f32.mrf.mxu1 }
 0x1cc   : > { %964 = vst.msk [vmem:[%s1696_s23 + $0x70] sm:$0xff] %vm721_vm6, %v944_v2  ;;  %v903_v4 = vpop.f32.mrf.mxu0  ;;  %v936_v61 = vadd.f32 %v1095_v18, %v935_v57 }
 0x1cd   : > { %956 = vst.msk [vmem:[%s1696_s23 + $0x30] sm:$0xff] %vm721_vm6, %v912_v45  ;;  %v904_v1 = vadd.f32 %v1095_v18, %v903_v4  ;;  %v1150_v6 = vpop.f32.mrf.mxu1 }
 0x1ce   : > { %962 = vst.msk [vmem:[%s1696_s23 + $0x60] sm:$0xff] %vm721_vm6, %v936_v61  ;;  %v1142_v5 = vpop.f32.mrf.mxu0  ;;  %v947_v9 = vadd.f32 %v1150_v6, %v1095_v18 }
 0x1cf   : > { %954 = vst.msk [vmem:[%s1696_s23 + $0x20] sm:$0xff] %vm721_vm6, %v904_v1  ;;  %v915_v10 = vadd.f32 %v1142_v5, %v1095_v18  ;;  %v938_v13 = vpop.f32.mrf.mxu1 }
 0x1d0   : > { %965 = vst.msk [vmem:[%s1696_s23 + $0x78] sm:$0xff] %vm721_vm6, %v947_v9  ;;  %v906_v8 = vpop.f32.mrf.mxu0  ;;  %v939_v49 = vadd.f32 %v1095_v18, %v938_v13 }
 0x1d1   : > { %957 = vst.msk [vmem:[%s1696_s23 + $0x38] sm:$0xff] %vm721_vm6, %v915_v10  ;;  %v907_v16 = vadd.f32 %v1095_v18, %v906_v8 }
 0x1d2   : > { %963 = vst.msk [vmem:[%s1696_s23 + $0x68] sm:$0xff] %vm721_vm6, %v939_v49 }
 0x1d3   : > { %955 = vst.msk [vmem:[%s1696_s23 + $0x28] sm:$0xff] %vm721_vm6, %v907_v16 }
 0x1d4 PF: > { %s14_s19 = sadd.s32 1, %s1251_s19   ;;  %s1751_s15 = smov %s1243_s17 }
 0x1d5   : > { %p11_p9 = scmp.ge.s32.totalorder %s14_s19, 6   ;;  %s1752_s16 = smov %s1247_s18 }
 0x1d6   : > { %s1753_s17 = smov %s1756_s20  ;;  %s1754_s18 = smov %s1760_s21 }
 0x1d7   :  { %13 = sbr.rel (!%p11_p9) target bundleno = 3 (0x3), region = 69 }

</bundles_post_ra>
